<compile_context>
chip_gen: v6e
topology: v6e:2x2x1
jax: 0.10.0
libtpu: 0.0.40
codegen_flags: <defaults>
</compile_context>

<pallas_src>
import functools
import math

import jax
import jax.numpy as jnp
from jax.experimental import pallas as pl
from jax.experimental.pallas import tpu as pltpu

LN_EPS = 1e-5
_INV_SQRT2 = 1.0 / math.sqrt(2.0)
_SQRT_2_OVER_PI = math.sqrt(2.0 / math.pi)

_HAS_BUFFERED = hasattr(pl, "Buffered")
_PIPELINE_MODE_ERRORS = tuple(
    e for e in (TypeError, NotImplementedError,
                getattr(pltpu, "LoweringException", None)) if e is not None)


def _mlp1_kernel(x_ref, gamma_ref, beta_ref, w1_ref, b1_ref, w2_ref, b2_ref,
                 o_ref, xn_ref, acc_ref, *, d_real, d_pad, approx_gelu):
    """Grid = (row_blocks, ed_blocks); the ED axis is the reduction axis."""
    j = pl.program_id(1)

    @pl.when(j == 0)
    def _init():
        # LayerNorm once per row block; cache the (matmul-dtype) result.
        # Padded feature columns of x are zero; gamma/beta pads are zero, so
        # the padded columns of xn come out exactly zero.
        x = x_ref[...].astype(jnp.float32)
        mean = jnp.sum(x, axis=-1, keepdims=True) * (1.0 / d_real)
        centered = x - mean
        ssq = jnp.sum(centered * centered, axis=-1, keepdims=True)
        if d_pad != d_real:
            # padded (zero) columns each contribute mean^2 to ssq; remove it.
            ssq = ssq - float(d_pad - d_real) * mean * mean
        var = ssq * (1.0 / d_real)
        xn = centered * jax.lax.rsqrt(var + LN_EPS)
        xn = (xn * gamma_ref[...].astype(jnp.float32)
              + beta_ref[...].astype(jnp.float32))
        xn_ref[...] = xn.astype(xn_ref.dtype)
        # Fold residual + b2 into the accumulator init -> finalize is a store.
        acc_ref[...] = x + b2_ref[...].astype(jnp.float32)

    # Linear1 slab + GELU.
    h = jnp.dot(xn_ref[...], w1_ref[...], preferred_element_type=jnp.float32)
    h = h + b1_ref[...].astype(jnp.float32)
    if approx_gelu:
        # tanh-approx GELU: exp/tanh run on the EUP slot (frees the f32 VALU
        # slot on v6e/v7x for small/mid D).
        h = 0.5 * h * (1.0 + jnp.tanh(
            _SQRT_2_OVER_PI * (h + 0.044715 * h * h * h)))
    else:
        # Exact erf GELU (nn.GELU() default).
        # NOTE: on v6e/v7x with small D this erf polynomial can bind the VALU
        # slot; pass approx_gelu=True to move the work to the EUP.
        h = 0.5 * h * (1.0 + jax.lax.erf(h * _INV_SQRT2))

    # Dropout with drop_rate=0 is the identity (eval semantics).
    # TODO(synk): stochastic dropout (drop_rate > 0, training) not implemented.

    # Linear2 slab, accumulate in f32.
    acc_ref[...] += jnp.dot(h.astype(w2_ref.dtype), w2_ref[...],
                            preferred_element_type=jnp.float32)

    @pl.when(j == pl.num_programs(1) - 1)
    def _finalize():
        o_ref[...] = acc_ref[...].astype(o_ref.dtype)


def _round_up(a, b):
    return (a + b - 1) // b * b


def _vmem_capacity_bytes():
    try:
        return int(pltpu.get_tpu_info().vmem_capacity_bytes)
    except Exception:  # pragma: no cover - conservative fallback (v7x per-TC)
        return 64 * 1024 * 1024


def _estimate_vmem(br, d_pad, ed_tile, x_bytes, w_bytes, w_bufs):
    weights = 2 * d_pad * ed_tile * w_bytes * w_bufs     # w1 + w2 slabs
    consts = (3 * d_pad + ed_tile) * 4 * 2               # gamma/beta/b2 + b1
    io_tiles = 2 * 2 * br * d_pad * x_bytes              # x + out, 2 buffers
    scratch = br * d_pad * (w_bytes + 4)                 # xn cache + f32 acc
    interm = br * ed_tile * (4 + w_bytes)                # f32 GELU h + cast
    return weights + consts + io_tiles + scratch + interm


def _choose_tiles(n, d_pad, ed_pad, x_bytes, w_bytes, block_rows, cap):
    """Pick (row block, ed tile, n_ed, weights_resident, slab_bufs)."""
    budget = int(0.7 * cap)
    slab_bufs = 3 if cap >= 100 * 1024 * 1024 else 2     # Buffered(3) only on
    row_align = 16 if w_bytes == 2 else 8                # 128 MiB parts
    if block_rows is None:
        # Weight-streaming arithmetic intensity ~= br FLOP/byte:
        # need ~720 on v6e, ~320 per-TC on v7x, ~240 on v5e.
        block_rows = 1024 if cap >= 100 * 1024 * 1024 else 512
    br = max(_round_up(min(int(block_rows), _round_up(n, row_align)),
                       row_align), row_align)

    while True:
        # Prefer fully resident weights: DMA'd once, single-buffered.
        if _estimate_vmem(br, d_pad, ed_pad, x_bytes, w_bytes, 1) <= budget:
            return br, ed_pad, 1, True, slab_bufs
        # Otherwise: largest 128-multiple divisor of ed_pad whose streamed
        # slabs (w1 + w2, slab_bufs-deep) fit the budget.
        ed_tile = None
        t = 128
        while t <= ed_pad:
            if (ed_pad % t == 0 and
                    _estimate_vmem(br, d_pad, t, x_bytes, w_bytes,
                                   slab_bufs) <= budget):
                ed_tile = t
            t += 128
        if ed_tile is not None:
            return br, ed_tile, ed_pad // ed_tile, False, slab_bufs
        if br <= row_align:
            # Nothing fits cleanly (enormous D on a small-VMEM part); take the
            # smallest lane-aligned slab and let the compiler decide.
            return br, 128, ed_pad // 128, False, slab_bufs
        br = max(_round_up(br // 2, row_align), row_align)


def mlp1_forward(x, params, *, block_rows=None, matmul_dtype=jnp.bfloat16,
                 approx_gelu=False):
    """x: (..., D).  params: gamma, beta, w1 (D,E*D), b1, w2 (E*D,D), b2."""
    orig_shape = x.shape
    d = orig_shape[-1]
    x2 = x.reshape(-1, d)
    n = x2.shape[0]

    gamma = params["gamma"].reshape(1, d).astype(jnp.float32)
    beta = params["beta"].reshape(1, d).astype(jnp.float32)
    w1 = params["w1"].astype(matmul_dtype)            # (D, E*D), cast once
    b1 = params["b1"].reshape(1, -1).astype(jnp.float32)
    w2 = params["w2"].astype(matmul_dtype)            # (E*D, D), cast once
    b2 = params["b2"].reshape(1, d).astype(jnp.float32)
    ed = w1.shape[1]
    assert w2.shape == (ed, d), "w2 must be (expand*dim_hidden, dim_hidden)"

    # Lane-dense padding: D and E*D to multiples of 128 (256-aligned already
    # when D is). Padded columns are mathematically inert (see kernel notes).
    d_pad = _round_up(d, 128)
    ed_pad = _round_up(ed, 128)
    if d_pad != d:
        pc = d_pad - d
        x2 = jnp.pad(x2, ((0, 0), (0, pc)))
        gamma = jnp.pad(gamma, ((0, 0), (0, pc)))      # zeros -> xn pads = 0
        beta = jnp.pad(beta, ((0, 0), (0, pc)))
        b2 = jnp.pad(b2, ((0, 0), (0, pc)))
        w1 = jnp.pad(w1, ((0, pc), (0, 0)))
        w2 = jnp.pad(w2, ((0, 0), (0, pc)))
    if ed_pad != ed:
        pc = ed_pad - ed
        w1 = jnp.pad(w1, ((0, 0), (0, pc)))
        b1 = jnp.pad(b1, ((0, 0), (0, pc)))
        w2 = jnp.pad(w2, ((0, pc), (0, 0)))

    x_bytes = jnp.dtype(x2.dtype).itemsize
    w_bytes = jnp.dtype(matmul_dtype).itemsize
    cap = _vmem_capacity_bytes()
    br, ed_tile, n_ed, resident, slab_bufs = _choose_tiles(
        n, d_pad, ed_pad, x_bytes, w_bytes, block_rows, cap)

    n_pad = _round_up(max(n, br), br)
    if n_pad != n:
        x2 = jnp.pad(x2, ((0, n_pad - n), (0, 0)))
    n_rows = n_pad // br

    est = _estimate_vmem(br, d_pad, ed_tile, x_bytes, w_bytes,
                         1 if resident else slab_bufs)
    vmem_limit = int(min(cap * 0.8, max(1.5 * est + (8 << 20), 32 << 20)))

    kernel = functools.partial(_mlp1_kernel, d_real=d, d_pad=d_pad,
                               approx_gelu=approx_gelu)

    if resident:
        w1_map = lambda i, j: (0, 0)
        b1_map = lambda i, j: (0, 0)
        w2_map = lambda i, j: (0, 0)
        w_bufs = 1                                     # single-buffer resident
    else:
        w1_map = lambda i, j: (0, j)
        b1_map = lambda i, j: (0, j)
        w2_map = lambda i, j: (j, 0)
        w_bufs = 3 if slab_bufs == 3 else None         # Buffered(3) on 128 MiB

    def _build(use_pipeline_mode):
        def spec(shape, index_map, bufs):
            if use_pipeline_mode and bufs is not None:
                return pl.BlockSpec(shape, index_map,
                                    pipeline_mode=pl.Buffered(bufs))
            return pl.BlockSpec(shape, index_map)

        in_specs = [
            pl.BlockSpec((br, d_pad), lambda i, j: (i, 0)),        # x tile
            spec((1, d_pad), lambda i, j: (0, 0), 1),              # gamma
            spec((1, d_pad), lambda i, j: (0, 0), 1),              # beta
            spec((d_pad, ed_tile), w1_map, w_bufs),                # w1 slab
            spec((1, ed_tile), b1_map, w_bufs),                    # b1 slab
            spec((ed_tile, d_pad), w2_map, w_bufs),                # w2 slab
            spec((1, d_pad), lambda i, j: (0, 0), 1),              # b2
        ]
        out_spec = pl.BlockSpec((br, d_pad), lambda i, j: (i, 0))

        return pl.pallas_call(
            kernel,
            out_shape=jax.ShapeDtypeStruct((n_pad, d_pad), x.dtype),
            grid_spec=pltpu.PrefetchScalarGridSpec(
                num_scalar_prefetch=0,
                grid=(n_rows, n_ed),
                in_specs=in_specs,
                out_specs=out_spec,
                scratch_shapes=[
                    pltpu.VMEM((br, d_pad), matmul_dtype),  # cached LN output
                    pltpu.VMEM((br, d_pad), jnp.float32),   # f32 accumulator
                ]),
            compiler_params=pltpu.CompilerParams(
                dimension_semantics=("parallel", "arbitrary"),
                vmem_limit_bytes=vmem_limit),
        )

    try:
        out = _build(_HAS_BUFFERED)(x2, gamma, beta, w1, b1, w2, b2)
    except _PIPELINE_MODE_ERRORS:
        # Narrow fallback: only when pipeline_mode=pl.Buffered(n) itself is
        # rejected; genuine VMEM / layout errors propagate unmasked.
        out = _build(False)(x2, gamma, beta, w1, b1, w2, b2)

    if n_pad != n:
        out = out[:n]
    if d_pad != d:
        out = out[:, :d]
    return out.reshape(orig_shape)


def init_params(key, dim_hidden, expand=1, dtype=jnp.float32):
    # NOTE: the original module declares linear2 = nn.Linear(dim_hidden,
    # dim_hidden); its forward only shape-checks when expand == 1 (the
    # default), which is what we reproduce here (w2: (expand*D, D)).
    k1, k2, k3, k4 = jax.random.split(key, 4)
    d_in = dim_hidden
    d_mid = expand * dim_hidden
    lim1 = 1.0 / math.sqrt(d_in)
    lim2 = 1.0 / math.sqrt(d_mid)
    return {
        "gamma": jnp.ones((dim_hidden,), dtype),
        "beta": jnp.zeros((dim_hidden,), dtype),
        # stored as (in, out); PyTorch Linear weight is (out, in)
        "w1": jax.random.uniform(k1, (d_in, d_mid), dtype, -lim1, lim1),
        "b1": jax.random.uniform(k2, (d_mid,), dtype, -lim1, lim1),
        "w2": jax.random.uniform(k3, (d_mid, dim_hidden), dtype, -lim2, lim2),
        "b2": jax.random.uniform(k4, (dim_hidden,), dtype, -lim2, lim2),
    }


def mlp1_reference(x, params):
    """Pure-JAX reference for correctness check."""
    mean = jnp.mean(x, axis=-1, keepdims=True)
    var = jnp.mean((x - mean) ** 2, axis=-1, keepdims=True)
    h = (x - mean) / jnp.sqrt(var + LN_EPS)
    h = h * params["gamma"] + params["beta"]
    h = h @ params["w1"] + params["b1"]
    h = 0.5 * h * (1.0 + jax.lax.erf(h * _INV_SQRT2))
    h = h @ params["w2"] + params["b2"]
    return h + x


if __name__ == "__main__":
    key = jax.random.PRNGKey(0)
    kx, kp, kx2 = jax.random.split(key, 3)

    batch, seq, dim_hidden, expand = 2, 8, 32, 1
    x = jax.random.normal(kx, (batch, seq, dim_hidden), jnp.float32)
    params = init_params(kp, dim_hidden, expand)
    ref = mlp1_reference(x, params)

    # Default fast path: bf16 MXU operands, f32 LN/GELU/accumulation.
    out = mlp1_forward(x, params)
    jax.block_until_ready(out)
    assert out.shape == x.shape
    assert jnp.allclose(out, ref, atol=3e-2, rtol=3e-2), "bf16 path mismatch"

    # f32-operand path: tighter agreement with the reference.
    out_f32 = mlp1_forward(x, params, matmul_dtype=jnp.float32)
    jax.block_until_ready(out_f32)
    assert jnp.allclose(out_f32, ref, atol=1e-2, rtol=1e-2), "f32 path mismatch"

    # Row count not a multiple of the row tile exercises the padding path.
    x_odd = jax.random.normal(kx2, (3, 5, dim_hidden), jnp.float32)
    out_odd = mlp1_forward(x_odd, params)
    jax.block_until_ready(out_odd)
    ref_odd = mlp1_reference(x_odd, params)
    assert jnp.allclose(out_odd, ref_odd, atol=3e-2, rtol=3e-2), "padded mismatch"

    print("KERNEL_OK")
</pallas_src>

<mosaic_0001>
module attributes {stable_mosaic.version = 11 : i64} {
  func.func @_mlp1_kernel(%arg0: i32, %arg1: i32, %arg2: memref<16x128xf32, #tpu.memory_space<vmem>>, %arg3: memref<1x128xf32, #tpu.memory_space<vmem>>, %arg4: memref<1x128xf32, #tpu.memory_space<vmem>>, %arg5: memref<128x128xbf16, #tpu.memory_space<vmem>>, %arg6: memref<1x128xf32, #tpu.memory_space<vmem>>, %arg7: memref<128x128xbf16, #tpu.memory_space<vmem>>, %arg8: memref<1x128xf32, #tpu.memory_space<vmem>>, %arg9: memref<16x128xf32, #tpu.memory_space<vmem>>, %arg10: memref<16x128xbf16, #tpu.memory_space<vmem>>, %arg11: memref<16x128xf32, #tpu.memory_space<vmem>>) attributes {dimension_semantics = [#tpu.dimension_semantics<parallel>, #tpu.dimension_semantics<arbitrary>], iteration_bounds = array<i64: 1, 1>, scalar_prefetch = 0 : i64, scratch_operands = 2 : i64, tpu.core_type = #tpu.core_type<tc>, window_params = [{transform_indices = @transform_0, window_bounds = array<i64: 16, 128>}, {pipeline_mode = #tpu.pipeline_mode<synchronous>, transform_indices = @transform_1, window_bounds = array<i64: 1, 128>}, {pipeline_mode = #tpu.pipeline_mode<synchronous>, transform_indices = @transform_2, window_bounds = array<i64: 1, 128>}, {pipeline_mode = #tpu.pipeline_mode<synchronous>, transform_indices = @transform_3, window_bounds = array<i64: 128, 128>}, {pipeline_mode = #tpu.pipeline_mode<synchronous>, transform_indices = @transform_4, window_bounds = array<i64: 1, 128>}, {pipeline_mode = #tpu.pipeline_mode<synchronous>, transform_indices = @transform_5, window_bounds = array<i64: 128, 128>}, {pipeline_mode = #tpu.pipeline_mode<synchronous>, transform_indices = @transform_6, window_bounds = array<i64: 1, 128>}, {transform_indices = @transform_7, window_bounds = array<i64: 16, 128>}]} {
    %c0_i32 = arith.constant 0 : i32
    %0 = arith.cmpi eq, %arg1, %c0_i32 : i32
    %1 = arith.extui %0 : i1 to i32
    %c0_i32_0 = arith.constant 0 : i32
    %2 = arith.cmpi ne, %1, %c0_i32_0 : i32
    scf.if %2 {
      %c0_18 = arith.constant 0 : index
      %c0_19 = arith.constant 0 : index
      %26 = vector.load %arg2[%c0_18, %c0_19] : memref<16x128xf32, #tpu.memory_space<vmem>>, vector<16x128xf32>
      %cst_20 = arith.constant dense<0.000000e+00> : vector<16xf32>
      %27 = vector.multi_reduction <add>, %26, %cst_20 [1] : vector<16x128xf32> to vector<16xf32>
      %28 = vector.shape_cast %27 : vector<16xf32> to vector<16x1xf32>
      %cst_21 = arith.constant 3.125000e-02 : f32
      %29 = vector.broadcast %cst_21 : f32 to vector<16x1xf32>
      %30 = arith.mulf %28, %29 : vector<16x1xf32>
      %31 = vector.broadcast %30 : vector<16x1xf32> to vector<16x128xf32>
      %32 = arith.subf %26, %31 : vector<16x128xf32>
      %33 = arith.mulf %32, %32 : vector<16x128xf32>
      %cst_22 = arith.constant dense<0.000000e+00> : vector<16xf32>
      %34 = vector.multi_reduction <add>, %33, %cst_22 [1] : vector<16x128xf32> to vector<16xf32>
      %35 = vector.shape_cast %34 : vector<16xf32> to vector<16x1xf32>
      %cst_23 = arith.constant 9.600000e+01 : f32
      %36 = vector.broadcast %cst_23 : f32 to vector<16x1xf32>
      %37 = arith.mulf %36, %30 : vector<16x1xf32>
      %38 = arith.mulf %37, %30 : vector<16x1xf32>
      %39 = arith.subf %35, %38 : vector<16x1xf32>
      %cst_24 = arith.constant 3.125000e-02 : f32
      %40 = vector.broadcast %cst_24 : f32 to vector<16x1xf32>
      %41 = arith.mulf %39, %40 : vector<16x1xf32>
      %cst_25 = arith.constant 9.99999974E-6 : f32
      %42 = vector.broadcast %cst_25 : f32 to vector<16x1xf32>
      %43 = arith.addf %41, %42 : vector<16x1xf32>
      %44 = math.rsqrt %43 : vector<16x1xf32>
      %45 = vector.broadcast %44 : vector<16x1xf32> to vector<16x128xf32>
      %46 = arith.mulf %32, %45 : vector<16x128xf32>
      %c0_26 = arith.constant 0 : index
      %c0_27 = arith.constant 0 : index
      %47 = vector.load %arg3[%c0_26, %c0_27] : memref<1x128xf32, #tpu.memory_space<vmem>>, vector<1x128xf32>
      %48 = vector.broadcast %47 : vector<1x128xf32> to vector<16x128xf32>
      %49 = arith.mulf %46, %48 : vector<16x128xf32>
      %c0_28 = arith.constant 0 : index
      %c0_29 = arith.constant 0 : index
      %50 = vector.load %arg4[%c0_28, %c0_29] : memref<1x128xf32, #tpu.memory_space<vmem>>, vector<1x128xf32>
      %51 = vector.broadcast %50 : vector<1x128xf32> to vector<16x128xf32>
      %52 = arith.addf %49, %51 : vector<16x128xf32>
      %53 = arith.truncf %52 : vector<16x128xf32> to vector<16x128xbf16>
      %c0_30 = arith.constant 0 : index
      %c0_31 = arith.constant 0 : index
      %54 = vector.load %arg10[%c0_30, %c0_31] : memref<16x128xbf16, #tpu.memory_space<vmem>>, vector<16x128xbf16>
      tpu.vector_store %arg10[%c0_30, %c0_31], %53 {strides = array<i32>} : memref<16x128xbf16, #tpu.memory_space<vmem>>, vector<16x128xbf16>,
      %c0_32 = arith.constant 0 : index
      %c0_33 = arith.constant 0 : index
      %55 = vector.load %arg8[%c0_32, %c0_33] : memref<1x128xf32, #tpu.memory_space<vmem>>, vector<1x128xf32>
      %56 = vector.broadcast %55 : vector<1x128xf32> to vector<16x128xf32>
      %57 = arith.addf %26, %56 : vector<16x128xf32>
      %c0_34 = arith.constant 0 : index
      %c0_35 = arith.constant 0 : index
      %58 = vector.load %arg11[%c0_34, %c0_35] : memref<16x128xf32, #tpu.memory_space<vmem>>, vector<16x128xf32>
      tpu.vector_store %arg11[%c0_34, %c0_35], %57 {strides = array<i32>} : memref<16x128xf32, #tpu.memory_space<vmem>>, vector<16x128xf32>,
    } else {
    }
    %c0 = arith.constant 0 : index
    %c0_1 = arith.constant 0 : index
    %3 = vector.load %arg10[%c0, %c0_1] : memref<16x128xbf16, #tpu.memory_space<vmem>>, vector<16x128xbf16>
    %c0_2 = arith.constant 0 : index
    %c0_3 = arith.constant 0 : index
    %4 = vector.load %arg5[%c0_2, %c0_3] : memref<128x128xbf16, #tpu.memory_space<vmem>>, vector<128x128xbf16>
    %cst = arith.constant dense<0.000000e+00> : vector<16x128xf32>
    %5 = tpu.matmul %3, %4, %cst {dimension_numbers = #tpu.dot_dimension_numbers<[1], [0], [0], [1], [0, 0, 1, 1], [], []>} : vector<16x128xbf16>, vector<128x128xbf16>, vector<16x128xf32> -> vector<16x128xf32>
    %c0_4 = arith.constant 0 : index
    %c0_5 = arith.constant 0 : index
    %6 = vector.load %arg6[%c0_4, %c0_5] : memref<1x128xf32, #tpu.memory_space<vmem>>, vector<1x128xf32>
    %7 = vector.broadcast %6 : vector<1x128xf32> to vector<16x128xf32>
    %8 = arith.addf %5, %7 : vector<16x128xf32>
    %cst_6 = arith.constant 5.000000e-01 : f32
    %9 = vector.broadcast %cst_6 : f32 to vector<16x128xf32>
    %10 = arith.mulf %9, %8 : vector<16x128xf32>
    %cst_7 = arith.constant 0.707106769 : f32
    %11 = vector.broadcast %cst_7 : f32 to vector<16x128xf32>
    %12 = arith.mulf %8, %11 : vector<16x128xf32>
    %13 = math.erf %12 : vector<16x128xf32>
    %cst_8 = arith.constant 1.000000e+00 : f32
    %14 = vector.broadcast %cst_8 : f32 to vector<16x128xf32>
    %15 = arith.addf %14, %13 : vector<16x128xf32>
    %16 = arith.mulf %10, %15 : vector<16x128xf32>
    %c0_9 = arith.constant 0 : index
    %c0_10 = arith.constant 0 : index
    %17 = vector.load %arg11[%c0_9, %c0_10] : memref<16x128xf32, #tpu.memory_space<vmem>>, vector<16x128xf32>
    %18 = arith.truncf %16 : vector<16x128xf32> to vector<16x128xbf16>
    %c0_11 = arith.constant 0 : index
    %c0_12 = arith.constant 0 : index
    %19 = vector.load %arg7[%c0_11, %c0_12] : memref<128x128xbf16, #tpu.memory_space<vmem>>, vector<128x128xbf16>
    %cst_13 = arith.constant dense<0.000000e+00> : vector<16x128xf32>
    %20 = tpu.matmul %18, %19, %cst_13 {dimension_numbers = #tpu.dot_dimension_numbers<[1], [0], [0], [1], [0, 0, 1, 1], [], []>} : vector<16x128xbf16>, vector<128x128xbf16>, vector<16x128xf32> -> vector<16x128xf32>
    %21 = arith.addf %17, %20 : vector<16x128xf32>
    %c0_14 = arith.constant 0 : index
    %c0_15 = arith.constant 0 : index
    %22 = vector.load %arg11[%c0_14, %c0_15] : memref<16x128xf32, #tpu.memory_space<vmem>>, vector<16x128xf32>
    tpu.vector_store %arg11[%c0_14, %c0_15], %21 {strides = array<i32>} : memref<16x128xf32, #tpu.memory_space<vmem>>, vector<16x128xf32>,
    %c0_i32_16 = arith.constant 0 : i32
    %23 = arith.cmpi eq, %arg1, %c0_i32_16 : i32
    %24 = arith.extui %23 : i1 to i32
    %c0_i32_17 = arith.constant 0 : i32
    %25 = arith.cmpi ne, %24, %c0_i32_17 : i32
    scf.if %25 {
      %c0_18 = arith.constant 0 : index
      %c0_19 = arith.constant 0 : index
      %26 = vector.load %arg11[%c0_18, %c0_19] : memref<16x128xf32, #tpu.memory_space<vmem>>, vector<16x128xf32>
      %c0_20 = arith.constant 0 : index
      %c0_21 = arith.constant 0 : index
      %27 = vector.load %arg9[%c0_20, %c0_21] : memref<16x128xf32, #tpu.memory_space<vmem>>, vector<16x128xf32>
      tpu.vector_store %arg9[%c0_20, %c0_21], %26 {strides = array<i32>} : memref<16x128xf32, #tpu.memory_space<vmem>>, vector<16x128xf32>,
    } else {
    }
    return
  }
  func.func @transform_0(%arg0: i32, %arg1: i32) -> (i32, i32) {
    %c0_i32 = arith.constant 0 : i32
    %c0_i32_0 = arith.constant 0 : i32
    return %arg0, %c0_i32 : i32, i32
  }
  func.func @transform_1(%arg0: i32, %arg1: i32) -> (i32, i32) {
    %c0_i32 = arith.constant 0 : i32
    %c0_i32_0 = arith.constant 0 : i32
    %c0_i32_1 = arith.constant 0 : i32
    return %c0_i32, %c0_i32_0 : i32, i32
  }
  func.func @transform_2(%arg0: i32, %arg1: i32) -> (i32, i32) {
    %c0_i32 = arith.constant 0 : i32
    %c0_i32_0 = arith.constant 0 : i32
    %c0_i32_1 = arith.constant 0 : i32
    return %c0_i32, %c0_i32_0 : i32, i32
  }
  func.func @transform_3(%arg0: i32, %arg1: i32) -> (i32, i32) {
    %c0_i32 = arith.constant 0 : i32
    %c0_i32_0 = arith.constant 0 : i32
    %c0_i32_1 = arith.constant 0 : i32
    return %c0_i32, %c0_i32_0 : i32, i32
  }
  func.func @transform_4(%arg0: i32, %arg1: i32) -> (i32, i32) {
    %c0_i32 = arith.constant 0 : i32
    %c0_i32_0 = arith.constant 0 : i32
    %c0_i32_1 = arith.constant 0 : i32
    return %c0_i32, %c0_i32_0 : i32, i32
  }
  func.func @transform_5(%arg0: i32, %arg1: i32) -> (i32, i32) {
    %c0_i32 = arith.constant 0 : i32
    %c0_i32_0 = arith.constant 0 : i32
    %c0_i32_1 = arith.constant 0 : i32
    return %c0_i32, %c0_i32_0 : i32, i32
  }
  func.func @transform_6(%arg0: i32, %arg1: i32) -> (i32, i32) {
    %c0_i32 = arith.constant 0 : i32
    %c0_i32_0 = arith.constant 0 : i32
    %c0_i32_1 = arith.constant 0 : i32
    return %c0_i32, %c0_i32_0 : i32, i32
  }
  func.func @transform_7(%arg0: i32, %arg1: i32) -> (i32, i32) {
    %c0_i32 = arith.constant 0 : i32
    %c0_i32_0 = arith.constant 0 : i32
    return %arg0, %c0_i32 : i32, i32
  }
}

</mosaic_0001>

<bundles_post_ra>
// kernel: tpu_custom_call.1
= control target key start
LH: loop header
LB: loop body
LE: loop exit
PB: predicated region body
PF: predicated region fallthrough
CT: control target
= control target key end

     0   :  { %12 = vsyncpa [#allocation5], 0  ;;  %s726_s0 = inlined_call_operand.hbm [shape: f32[16,128], index: 0, kind: input, shape index: {}]   ;;  %s727_s1 = inlined_call_operand.vmem [shape: f32[1,128], index: 1, kind: input, shape index: {}]   ;;  %s728_s2 = inlined_call_operand.vmem [shape: f32[1,128], index: 2, kind: input, shape index: {}]   ;;  %s729_s3 = inlined_call_operand.hbm [shape: bf16[128,128], index: 3, kind: input, shape index: {}]   ;;  %s730_s4 = inlined_call_operand.vmem [shape: f32[1,128], index: 4, kind: input, shape index: {}]   ;;  %s731_s5 = inlined_call_operand.hbm [shape: bf16[128,128], index: 5, kind: input, shape index: {}]   ;;  %s732_s6 = inlined_call_operand.vmem [shape: f32[1,128], index: 6, kind: input, shape index: {}]   ;;  %s733_s7 = inlined_call_operand.hbm [shape: f32[16,128], index: 7, kind: output, shape index: {}]  }
   0x1   :  { %13 = vsyncpa [#allocation8], 0 }
   0x2   :  { %14 = vsyncpa [#allocation6], 0  ;;  %s618_s24 = smov [#allocation7]  }
   0x3   :  { %s36_s25 = sshll.u32 %s618_s24, 4  ;;  %s37_s25 = int_to_ptr.vmem [resolvable:$true] %s36_s25 }
   0x4   :  { %s540_s26 = scalar_lea.vmem %s37_s25, 1024  ;;  %p545_p1 = scmp.lt.s32.totalorder %s37_s25, %s37_s25 }
   0x5   :  { %p541_p0 = scmp.ne.s32.totalorder %s37_s25, %s540_s26  ;;  %p546_p2 = scmp.lt.s32.totalorder %s540_s26, %s540_s26 }
   0x7   :  { %p547_p3 = por %p546_p2, %p545_p1 }
   0x9   :  { %p548_p4 = pnand %p547_p3, %p541_p0 }
   0xb   :  { %551 = shalt.err (!%p548_p4)
}
   0xc   :  { %s619_s27 = smov 64   ;;  %s620_s28 = smov 4  }
   0xd   :  { %42 = dma.hbm_to_vmem [thread:$0]  %s729_s3, 1024, %s37_s25, [#allocation8], %s619_s27, %s619_s27, %s620_s28  }
   0xe   :  { %s621_s8 = smov [#allocation4]  }
   0xf   :  { %s20_s9 = sshll.u32 %s621_s8, 4  ;;  %s21_s9 = int_to_ptr.vmem [resolvable:$true] %s20_s9 }
  0x10   :  { %s560_s10 = scalar_lea.vmem %s21_s9, 256  ;;  %p565_p6 = scmp.lt.s32.totalorder %s21_s9, %s21_s9 }
  0x11   :  { %p561_p5 = scmp.ne.s32.totalorder %s21_s9, %s560_s10  ;;  %p566_p7 = scmp.lt.s32.totalorder %s560_s10, %s560_s10 }
  0x13   :  { %p567_p8 = por %p566_p7, %p565_p6 }
  0x15   :  { %p568_p9 = pnand %p567_p8, %p561_p5 }
  0x17   :  { %571 = shalt.err (!%p568_p9)
}
  0x18   :  { %s622_s11 = smov 128   ;;  %s623_s12 = smov 8  }
  0x19   :  { %26 = dma.hbm_to_vmem [thread:$0]  %s726_s0, 256, %s21_s9, [#allocation5], %s622_s11, %s622_s11, %s623_s12  }
  0x1a   :  { %s624_s3 = smov [#allocation9]  }
  0x1b   :  { %s50_s15 = sshll.u32 %s624_s3, 4  ;;  %s51_s15 = int_to_ptr.vmem [resolvable:$true] %s50_s15 }
  0x1c   :  { %s580_s16 = scalar_lea.vmem %s51_s15, 1024  ;;  %p585_p11 = scmp.lt.s32.totalorder %s51_s15, %s51_s15 }
  0x1d   :  { %p581_p10 = scmp.ne.s32.totalorder %s51_s15, %s580_s16  ;;  %p586_p12 = scmp.lt.s32.totalorder %s580_s16, %s580_s16 }
  0x1f   :  { %p587_p13 = por %p586_p12, %p585_p11 }
  0x21   :  { %p588_p0 = pnand %p587_p13, %p581_p10 }
  0x23   :  { %591 = shalt.err (!%p588_p0)
}
  0x24   :  { %56 = dma.hbm_to_vmem [thread:$0]  %s731_s5, 1024, %s51_s15, [#allocation8], %s619_s27, %s619_s27, %s620_s28  }
  0x25   :  { %612 = dma.done.wait [#allocation5], 256  }
  0x26   :  { %613 = vsyncadd [#allocation5], 4294967040 }
  0x27   :  { %614 = dma.done.wait [#allocation8], 2048  }
  0x28   :  { %615 = vsyncadd [#allocation8], 4294965248  ;;  %v680_v0 = vld [vmem:[#allocation4] sm:$0xff]  ;;  %v682_v1 = vld [vmem:[#allocation4 + $0x8] sm:$0xff]  ;;  %v625_v11 = vmov 0.0   ;;  %vm626_vm0 = vmmov 0  }
  0x29   :  { %75 = vadd.xlane.f32.xlu0 %v680_v0  ;;  %v507_v10 = vld [vmem:[#allocation7 + $0x38] sm:$0xff]   ;;  %457 = vmatprep.subr.bf16.mxu0 %v625_v11  ;;  %v508_v12 = vld [vmem:[#allocation7 + $0x30] sm:$0xff]   ;;  %v509_v13 = vld [vmem:[#allocation7 + $0x28] sm:$0xff]   ;;  %s627_s22 = smov [#allocation10]  }
  0x2a   :  { %477 = vmatprep.subr.bf16.mxu1 %v625_v11  ;;  %458 = vmatpush3.bf16.msra.mxu0 %v507_v10  ;;  %v510_v14 = vld [vmem:[#allocation7 + $0x20] sm:$0xff]   ;;  %v511_v15 = vld [vmem:[#allocation7 + $0x18] sm:$0xff]   ;;  %v512_v16 = vld [vmem:[#allocation7 + $0x10] sm:$0xff]   ;;  %s396_s23 = sshll.u32 %s627_s22, 4  ;;  %s397_s23 = int_to_ptr.vmem [resolvable:$true] %s396_s23 }
  0x2b   :  { %459 = vmatprep.subr.bf16.mxu0 %v625_v11  ;;  %v513_v17 = vld [vmem:[#allocation7 + $0x8] sm:$0xff]   ;;  %473 = vmatprep.mubr.msk.bf16.mxu0 %vm626_vm0, %v625_v11  ;;  %v514_v18 = vld [vmem:[#allocation7] sm:$0xff]   ;;  %v516_v19 = vld [vmem:[#allocation9 + $0x38] sm:$0xff]   ;;  %s592_s24 = scalar_lea.vmem %s397_s23, 256  ;;  %p597_p2 = scmp.lt.s32.totalorder %s397_s23, %s397_s23 }
  0x2c   :  { %493 = vmatprep.mubr.msk.bf16.mxu1 %vm626_vm0, %v625_v11  ;;  %478 = vmatpush3.bf16.msra.mxu1 %v516_v19  ;;  %v409_v34 = vld [vmem:[%s727_s1] ss:$0 sm:$0xff]  ;;  %v517_v44 = vld [vmem:[#allocation9 + $0x30] sm:$0xff]   ;;  %v519_v46 = vld [vmem:[#allocation9 + $0x20] sm:$0xff]   ;;  %p593_p1 = scmp.ne.s32.totalorder %s397_s23, %s592_s24  ;;  %p598_p3 = scmp.lt.s32.totalorder %s592_s24, %s592_s24 }
  0x2d   :  { %77 = vadd.xlane.f32.xlu0 %v682_v1  ;;  %479 = vmatprep.subr.bf16.mxu1 %v625_v11  ;;  %v410_v38 = vld [vmem:[%s728_s2] ss:$0 sm:$0xff]  ;;  %v520_v47 = vld [vmem:[#allocation9 + $0x18] sm:$0xff]   ;;  %v521_v48 = vld [vmem:[#allocation9 + $0x10] sm:$0xff]  }
  0x2e   :  { %460 = vmatpush3.bf16.msra.mxu0 %v508_v12  ;;  %v518_v45 = vld [vmem:[#allocation9 + $0x28] sm:$0xff]   ;;  %v523_v50 = vld [vmem:[#allocation9] sm:$0xff]   ;;  %p599_p4 = por %p598_p3, %p597_p2 }
  0x2f   :  { %461 = vmatprep.subr.bf16.mxu0 %v625_v11  ;;  %v522_v49 = vld [vmem:[#allocation9 + $0x8] sm:$0xff]  }
  0x30   :  { %480 = vmatpush3.bf16.msra.mxu1 %v517_v44  ;;  %v414_v51 = vld [vmem:[%s730_s4] ss:$0 sm:$0xff]  ;;  %p600_p5 = pnand %p599_p4, %p593_p1 }
  0x31   :  { %481 = vmatprep.subr.bf16.mxu1 %v625_v11 }
  0x32   :  { %462 = vmatpush3.bf16.msra.mxu0 %v509_v13 }
  0x33   :  { %463 = vmatprep.subr.bf16.mxu0 %v625_v11 }
  0x34   :  { %482 = vmatpush3.bf16.msra.mxu1 %v518_v45 }
  0x35   :  { %483 = vmatprep.subr.bf16.mxu1 %v625_v11 }
  0x36   :  { %464 = vmatpush3.bf16.msra.mxu0 %v510_v14 }
  0x37   :  { %465 = vmatprep.subr.bf16.mxu0 %v625_v11 }
  0x38   :  { %484 = vmatpush3.bf16.msra.mxu1 %v519_v46 }
  0x39   :  { %485 = vmatprep.subr.bf16.mxu1 %v625_v11 }
  0x3a   :  { %466 = vmatpush3.bf16.msra.mxu0 %v511_v15 }
  0x3b   :  { %467 = vmatprep.subr.bf16.mxu0 %v625_v11 }
  0x3c   :  { %486 = vmatpush3.bf16.msra.mxu1 %v520_v47 }
  0x3d   :  { %487 = vmatprep.subr.bf16.mxu1 %v625_v11 }
  0x3e   :  { %468 = vmatpush3.bf16.msra.mxu0 %v512_v16 }
  0x3f   :  { %469 = vmatprep.subr.bf16.mxu0 %v625_v11 }
  0x40   :  { %488 = vmatpush3.bf16.msra.mxu1 %v521_v48 }
  0x41   :  { %489 = vmatprep.subr.bf16.mxu1 %v625_v11 }
  0x42   :  { %470 = vmatpush3.bf16.msra.mxu0 %v513_v17 }
  0x43   :  { %471 = vmatprep.subr.bf16.mxu0 %v625_v11 }
  0x44   :  { %490 = vmatpush3.bf16.msra.mxu1 %v522_v49 }
  0x45   :  { %491 = vmatprep.subr.bf16.mxu1 %v625_v11 }
  0x46   :  { %472 = vmatpush3.bf16.msra.mxu0 %v514_v18 }
  0x48   :  { %492 = vmatpush3.bf16.msra.mxu1 %v523_v50 }
  0xb2   :  { %v76_v2 = vpop.xlane.xlu0 %75 }
  0xb3   :  { %v79_v3 = vmul.f32 0.03125, %v76_v2 }
  0xb5   :  { %v81_v4 = vsub.f32 %v680_v0, %v79_v3  ;;  %v89_v20 = vmul.f32 96.0, %v79_v3 }
  0xb6   :  { %v78_v5 = vpop.xlane.xlu0 %77 }
  0xb7   :  { %v80_v6 = vmul.f32 0.03125, %v78_v5  ;;  %v83_v7 = vmul.f32 %v81_v4, %v81_v4  ;;  %v91_v22 = vmul.f32 %v89_v20, %v79_v3 }
  0xb9   :  { %85 = vadd.xlane.f32.xlu1 %v83_v7  ;;  %v82_v8 = vsub.f32 %v682_v1, %v80_v6  ;;  %v90_v21 = vmul.f32 96.0, %v80_v6  ;;  %v413_v7 = vld [vmem:[%s732_s6] ss:$0 sm:$0xff] }
  0xba   :  { %v139_v11 = vadd.f32 %v413_v7, %v682_v1 }
  0xbb   :  { %v84_v9 = vmul.f32 %v82_v8, %v82_v8  ;;  %v92_v26 = vmul.f32 %v90_v21, %v80_v6 }
  0xbd   :  { %87 = vadd.xlane.f32.xlu1 %v84_v9 }
 0x142   :  { %v86_v23 = vpop.xlane.xlu1 %85 }
 0x143   :  { %v93_v24 = vsub.f32 %v86_v23, %v91_v22 }
 0x145   :  { %v95_v25 = vmul.f32 0.03125, %v93_v24 }
 0x146   :  { %v88_v27 = vpop.xlane.xlu1 %87 }
 0x147   :  { %v97_v28 = vadd.f32 1e-05, %v95_v25  ;;  %v94_v29 = vsub.f32 %v88_v27, %v92_v26 }
 0x149   :  { %524 = vrsqrt.f32 %v97_v28  ;;  %v96_v30 = vmul.f32 0.03125, %v94_v29 }
 0x14b   :  { %v98_v31 = vadd.f32 1e-05, %v96_v30 }
 0x14d   :  { %526 = vrsqrt.f32 %v98_v31 }
 0x156   :  { %v525_v32 = vpop.eup %524 }
 0x157   :  { %v101_v33 = vmul.f32 %v525_v32, %v81_v4 }
 0x159   :  { %v110_v36 = vmul.f32 %v409_v34, %v101_v33 }
 0x15a   :  { %v527_v35 = vpop.eup %526 }
 0x15b   :  { %v102_v37 = vmul.f32 %v527_v35, %v82_v8  ;;  %v119_v40 = vadd.f32 %v410_v38, %v110_v36  ;;  %v138_v8 = vadd.f32 %v413_v7, %v680_v0 }
 0x15d   :  { %v111_v39 = vmul.f32 %v409_v34, %v102_v37 }
 0x15f   :  { %v120_v41 = vadd.f32 %v410_v38, %v111_v39 }
 0x161   :  { %v437_v42 = vpack.c.bf16 %v120_v41, %v119_v40 }
 0x163   :  { %438 = vst [vmem:[#allocation2] sm:$0xff] %v437_v42  }
 0x16a   :  { %v515_v43 = vld [vmem:[#allocation2] sm:$0xff]  }
 0x16b   :  { %474 = vmatmul.mubr.bf16.vlgmr.msra.gmra.mxu0 %v515_v43 }
 0x22b   :  { %v255_v52 = vpop.f32.mrf.mxu0 }
 0x22c   :  { %v256_v53 = vadd.f32 %v414_v51, %v255_v52 }
 0x22d   :  { %v475_v54 = vpop.f32.mrf.mxu0 }
 0x22e   :  { %v264_v55 = vmul.f32 0.70710677, %v256_v53  ;;  %v262_v63 = vmul.f32 0.5, %v256_v53 }
 0x22f   :  { %v258_v56 = vpop.f32.mrf.mxu0 }
 0x230   :  { %528 = verf.f32 %v264_v55  ;;  %v259_v57 = vadd.f32 %v414_v51, %v258_v56 }
 0x231   :  { %v476_v58 = vpop.f32.mrf.mxu0 }
 0x232   :  { %v265_v59 = vmul.f32 0.70710677, %v259_v57  ;;  %v263_v2 = vmul.f32 0.5, %v259_v57 }
 0x234   :  { %530 = verf.f32 %v265_v59 }
 0x23d   :  { %v529_v60 = vpop.eup %528 }
 0x23e   :  { %v268_v61 = vadd.f32 1.0, %v529_v60 }
 0x240   :  { %v270_v4 = vmul.f32 %v268_v61, %v262_v63 }
 0x241   :  { %v531_v62 = vpop.eup %530 }
 0x242   :  { %v269_v3 = vadd.f32 1.0, %v531_v62 }
 0x244   :  { %v271_v5 = vmul.f32 %v269_v3, %v263_v2 }
 0x246   :  { %v274_v6 = vpack.c.bf16 %v271_v5, %v270_v4 }
 0x248   :  { %494 = vmatmul.mubr.bf16.vlgmr.msra.gmra.mxu1 %v274_v6 }
 0x308   :  { %v373_v9 = vpop.f32.mrf.mxu1 }
 0x309   :  { %v380_v10 = vadd.f32 %v373_v9, %v138_v8 }
 0x30a   :  { %v495_v12 = vpop.f32.mrf.mxu1 }
 0x30b   :  { %389 = vst [vmem:[#allocation10] sm:$0xff] %v380_v10 }
 0x30c   :  { %v376_v13 = vpop.f32.mrf.mxu1 }
 0x30d   :  { %v381_v14 = vadd.f32 %v376_v13, %v139_v11 }
 0x30e   :  { %v496_v15 = vpop.f32.mrf.mxu1 }
 0x30f   :  { %390 = vst [vmem:[#allocation10 + $0x8] sm:$0xff] %v381_v14 }
 0x310   :  { %603 = shalt.err (!%p600_p5)
}
 0x311   :  { %402 = dma.vmem_to_hbm [thread:$0]  %s397_s23, 256, %s733_s7, [#allocation6], %s622_s11, %s622_s11, %s623_s12  }
 0x312   :  { %616 = dma.done.wait [#allocation6], 256  }
 0x313   :  { %617 = vsyncadd [#allocation6], 4294967040 }
 0x314   :  { %406 = vsyncpa [#allocation5], 1 }
 0x315   :  { %407 = vsyncpa [#allocation8], 1 }
 0x316   :  { %408 = vsyncpa [#allocation6], 1 }

</bundles_post_ra>
